<compile_context>
chip_gen: v7x
topology: tpu7x:2x2x1
jax: 0.10.0
libtpu: 0.0.40
codegen_flags: <defaults>
</compile_context>

<pallas_src>
import functools

import jax
import jax.numpy as jnp
from jax.experimental import pallas as pl
from jax.experimental.pallas import tpu as pltpu


# ---------------------------------------------------------------------------
# HW-tile picker: largest multiple of 128 that divides HW and fits a VMEM
# budget (covers double-buffered input + output blocks); falls back to the
# full HW for small / non-128-multiple feature maps.
# ---------------------------------------------------------------------------
def _pick_hw_tile(HW, C, itemsize, budget_bytes=8 * 1024 * 1024):
    if HW % 128 != 0:
        return HW
    per_lane = max(1, 4 * C * max(itemsize, 4))            # ~2 in + 2 out bufs, f32-sized
    cap = max(128, min(2048, (budget_bytes // per_lane) // 128 * 128))
    best = 128
    t = 256
    while t <= min(HW, cap):
        if HW % t == 0:
            best = t
        t += 128
    return best


# ---------------------------------------------------------------------------
# Kernel 1: per-sample channel statistics (mean, sqrt(var_unbiased + eps))
#   grid = (B, HW//THW); the HW axis is a reduction ("arbitrary"); sum and
#   sum-of-squares accumulate in the resident (1, C, 1) output blocks.
# ---------------------------------------------------------------------------
def _stats_kernel(x_ref, mu_ref, sig_ref, *, eps, n):
    h = pl.program_id(1)
    x = x_ref[0].astype(jnp.float32)                        # (C, THW)
    s1 = jnp.sum(x, axis=1, keepdims=True)                  # (C, 1)
    s2 = jnp.sum(x * x, axis=1, keepdims=True)              # (C, 1)

    @pl.when(h == 0)
    def _():
        mu_ref[0] = s1
        sig_ref[0] = s2

    @pl.when(h != 0)
    def _():
        mu_ref[0] += s1
        sig_ref[0] += s2

    @pl.when(h == pl.num_programs(1) - 1)
    def _():
        s1_tot = mu_ref[0]
        s2_tot = sig_ref[0]
        mu = s1_tot / n
        # torch.var defaults to unbiased (divisor N-1)
        var = (s2_tot - n * mu * mu) / (n - 1.0)
        mu_ref[0] = mu
        sig_ref[0] = jnp.sqrt(var + eps)


def _compute_stats(x3, eps, thw):
    B, C, HW = x3.shape
    n_hw = HW // thw
    return pl.pallas_call(
        functools.partial(_stats_kernel, eps=float(eps), n=float(HW)),
        out_shape=(jax.ShapeDtypeStruct((B, C, 1), jnp.float32),
                   jax.ShapeDtypeStruct((B, C, 1), jnp.float32)),
        grid_spec=pltpu.PrefetchScalarGridSpec(
            num_scalar_prefetch=0,
            grid=(B, n_hw),
            in_specs=[pl.BlockSpec((1, C, thw), lambda b, h: (b, 0, h))],
            out_specs=(pl.BlockSpec((1, C, 1), lambda b, h: (b, 0, 0)),
                       pl.BlockSpec((1, C, 1), lambda b, h: (b, 0, 0)))),
        compiler_params=pltpu.CompilerParams(
            dimension_semantics=("parallel", "arbitrary")),
    )(x3)


# ---------------------------------------------------------------------------
# Kernel 2: per-channel affine pass  out = x * scale + offset
#   scale  = (sig + factor*gaussian_sig) / sig
#   offset = (mu + factor*gaussian_mu) - mu * scale
# (scale/offset are precomputed per (B, C) in plain JAX — O(B*C) work)
# ---------------------------------------------------------------------------
def _mix_kernel(x_ref, scale_ref, offset_ref, out_ref):
    x = x_ref[0].astype(jnp.float32)                        # (C, THW)
    out_ref[0] = (x * scale_ref[0] + offset_ref[0]).astype(out_ref.dtype)


def _apply_mix(x3, scale, offset, thw):
    B, C, HW = x3.shape
    n_hw = HW // thw
    return pl.pallas_call(
        _mix_kernel,
        out_shape=jax.ShapeDtypeStruct((B, C, HW), x3.dtype),
        grid_spec=pltpu.PrefetchScalarGridSpec(
            num_scalar_prefetch=0,
            grid=(B, n_hw),
            in_specs=[
                pl.BlockSpec((1, C, thw), lambda b, h: (b, 0, h)),   # x (native dtype)
                pl.BlockSpec((1, C, 1), lambda b, h: (b, 0, 0)),     # scale (f32)
                pl.BlockSpec((1, C, 1), lambda b, h: (b, 0, 0)),     # offset (f32)
            ],
            out_specs=pl.BlockSpec((1, C, thw), lambda b, h: (b, 0, h))),
        compiler_params=pltpu.CompilerParams(
            dimension_semantics=("parallel", "parallel")),
    )(x3, scale, offset)


# ---------------------------------------------------------------------------
# Plain-JAX glue: correlation matrix + eigh-based matrix square root.
# TODO(synk): torch.linalg.eigh (and its try/except fallback) has no Pallas
#             equivalent; the finite-ness fallback is reproduced with jnp.where.
# ---------------------------------------------------------------------------
def _corr_sqrt(stat_bc, eps):
    # stat_bc: (B, C) squeezed per-sample channel statistics
    B, C = stat_bc.shape
    mean = jnp.mean(stat_bc, axis=0, keepdims=True)                  # (1, C)
    centered = stat_bc - mean
    corr = centered.T @ centered / B                                  # (C, C)
    eye = jnp.eye(C, dtype=jnp.float32)
    _, V = jnp.linalg.eigh(C * corr + eps * eye)
    V = jnp.where(jnp.all(jnp.isfinite(V)), V, eye)
    d = jnp.sqrt(jnp.clip(jnp.diag(V.T @ corr @ V), 1e-12))
    return V @ jnp.diag(d) @ V.T                                      # (C, C)


def cdu_forward_pallas(x, factor, noise_mu, noise_sig, eps=1e-6):
    """Training-branch forward of CorrelatedDistributionUncertainty.

    x:         (B, C, H, W)   NCHW, any float dtype (streamed in native dtype)
    factor:    (B,)   Beta(alpha, alpha) samples
    noise_mu:  (B, C) standard normal samples  (== torch.randn(B, 1, C))
    noise_sig: (B, C) standard normal samples
    """
    B, C, H, W = x.shape
    HW = H * W
    assert HW >= 2, "unbiased variance (ddof=1) requires at least 2 spatial elements"
    x3 = x.reshape(B, C, HW)                                  # keep native dtype in HBM
    thw = _pick_hw_tile(HW, C, jnp.dtype(x.dtype).itemsize)

    # Pass 1: per-sample channel stats (Pallas streaming reduction).
    mu, sig = _compute_stats(x3, eps, thw)                    # each (B, C, 1) f32
    mu_bc = mu[..., 0]                                        # (B, C)
    sig_bc = sig[..., 0]                                      # (B, C)

    # Tiny CxC glue in plain JAX.
    M_mu = _corr_sqrt(mu_bc, eps)                             # (C, C)
    M_sig = _corr_sqrt(sig_bc, eps)                           # (C, C)

    f = factor.reshape(B, 1).astype(jnp.float32)
    g_mu = noise_mu.astype(jnp.float32) @ M_mu                # (B, C)
    g_sig = noise_sig.astype(jnp.float32) @ M_sig             # (B, C)
    mu_mix = mu_bc + f * g_mu
    sig_mix = sig_bc + f * g_sig

    # Fold into a single per-channel affine:  out = x*scale + offset
    scale = sig_mix / sig_bc                                  # (B, C)
    offset = mu_mix - mu_bc * scale                           # (B, C)

    # Pass 2: streaming affine (Pallas).
    out3 = _apply_mix(x3, scale[..., None], offset[..., None], thw)
    return out3.reshape(B, C, H, W)


# ---------------------------------------------------------------------------
# Pure-JAX reference (mirrors the PyTorch module line by line)
# ---------------------------------------------------------------------------
def cdu_forward_reference(x, factor, noise_mu, noise_sig, eps=1e-6):
    B, C, H, W = x.shape
    xf = x.astype(jnp.float32)
    mu = jnp.mean(xf, axis=(2, 3), keepdims=True)
    var = jnp.var(xf, axis=(2, 3), keepdims=True, ddof=1)
    sig = jnp.sqrt(var + eps)
    x_normed = (xf - mu) / sig

    mu_sq = mu[:, :, 0, 0]
    sig_sq = sig[:, :, 0, 0]
    M_mu = _corr_sqrt(mu_sq, eps)
    M_sig = _corr_sqrt(sig_sq, eps)

    gaussian_mu = (noise_mu.astype(jnp.float32) @ M_mu).reshape(B, C, 1, 1)
    gaussian_sig = (noise_sig.astype(jnp.float32) @ M_sig).reshape(B, C, 1, 1)
    f = factor.reshape(B, 1, 1, 1).astype(jnp.float32)
    mu_mix = mu + f * gaussian_mu
    sig_mix = sig + f * gaussian_sig
    return (x_normed * sig_mix + mu_mix).astype(x.dtype)


if __name__ == "__main__":
    B, C, H, W = 2, 4, 16, 16
    eps, alpha = 1e-6, 0.3

    key = jax.random.PRNGKey(0)
    k_x, k_beta, k_nmu, k_nsig = jax.random.split(key, 4)

    x = jax.random.normal(k_x, (B, C, H, W), dtype=jnp.float32)
    factor = jax.random.beta(k_beta, alpha, alpha, (B,)).astype(jnp.float32)
    noise_mu = jax.random.normal(k_nmu, (B, C), dtype=jnp.float32)
    noise_sig = jax.random.normal(k_nsig, (B, C), dtype=jnp.float32)

    out = cdu_forward_pallas(x, factor, noise_mu, noise_sig, eps=eps)
    out = jax.block_until_ready(out)

    ref = cdu_forward_reference(x, factor, noise_mu, noise_sig, eps=eps)
    ref = jax.block_until_ready(ref)

    assert out.shape == (B, C, H, W)
    assert out.dtype == x.dtype
    assert jnp.allclose(out, ref, rtol=1e-4, atol=1e-4), (
        f"max abs err {jnp.max(jnp.abs(out - ref))}")
    print("KERNEL_OK")
</pallas_src>

<mosaic_0001>
module attributes {stable_mosaic.version = 11 : i64} {
  func.func @_stats_kernel(%arg0: i32, %arg1: i32, %arg2: memref<1x4x256xf32, #tpu.memory_space<vmem>>, %arg3: memref<1x4x1xf32, #tpu.memory_space<vmem>>, %arg4: memref<1x4x1xf32, #tpu.memory_space<vmem>>) attributes {dimension_semantics = [#tpu.dimension_semantics<parallel>, #tpu.dimension_semantics<arbitrary>], iteration_bounds = array<i64: 2, 1>, scalar_prefetch = 0 : i64, scratch_operands = 0 : i64, tpu.core_type = #tpu.core_type<tc>, window_params = [{transform_indices = @transform_0, window_bounds = array<i64: 1, 4, 256>}, {transform_indices = @transform_1, window_bounds = array<i64: 1, 4, 1>}, {transform_indices = @transform_2, window_bounds = array<i64: 1, 4, 1>}]} {
    %c0 = arith.constant 0 : index
    %c0_0 = arith.constant 0 : index
    %c0_1 = arith.constant 0 : index
    %0 = vector.load %arg2[%c0, %c0_0, %c0_1] : memref<1x4x256xf32, #tpu.memory_space<vmem>>, vector<1x4x256xf32>
    %1 = vector.shape_cast %0 : vector<1x4x256xf32> to vector<4x256xf32>
    %cst = arith.constant dense<0.000000e+00> : vector<4xf32>
    %2 = vector.multi_reduction <add>, %1, %cst [1] : vector<4x256xf32> to vector<4xf32>
    %3 = vector.shape_cast %2 : vector<4xf32> to vector<4x1xf32>
    %4 = arith.mulf %1, %1 : vector<4x256xf32>
    %cst_2 = arith.constant dense<0.000000e+00> : vector<4xf32>
    %5 = vector.multi_reduction <add>, %4, %cst_2 [1] : vector<4x256xf32> to vector<4xf32>
    %6 = vector.shape_cast %5 : vector<4xf32> to vector<4x1xf32>
    %c0_i32 = arith.constant 0 : i32
    %7 = arith.cmpi eq, %arg1, %c0_i32 : i32
    %8 = arith.extui %7 : i1 to i32
    %c0_i32_3 = arith.constant 0 : i32
    %9 = arith.cmpi ne, %8, %c0_i32_3 : i32
    scf.if %9 {
      %c0_8 = arith.constant 0 : index
      %c0_9 = arith.constant 0 : index
      %c0_10 = arith.constant 0 : index
      %16 = vector.load %arg3[%c0_8, %c0_9, %c0_10] : memref<1x4x1xf32, #tpu.memory_space<vmem>>, vector<1x4x1xf32>
      %17 = vector.shape_cast %16 : vector<1x4x1xf32> to vector<4x1xf32>
      %18 = vector.shape_cast %3 : vector<4x1xf32> to vector<1x4x1xf32>
      tpu.vector_store %arg3[%c0_8, %c0_9, %c0_10], %18 {strides = array<i32>} : memref<1x4x1xf32, #tpu.memory_space<vmem>>, vector<1x4x1xf32>,
      %c0_11 = arith.constant 0 : index
      %c0_12 = arith.constant 0 : index
      %c0_13 = arith.constant 0 : index
      %19 = vector.load %arg4[%c0_11, %c0_12, %c0_13] : memref<1x4x1xf32, #tpu.memory_space<vmem>>, vector<1x4x1xf32>
      %20 = vector.shape_cast %19 : vector<1x4x1xf32> to vector<4x1xf32>
      %21 = vector.shape_cast %6 : vector<4x1xf32> to vector<1x4x1xf32>
      tpu.vector_store %arg4[%c0_11, %c0_12, %c0_13], %21 {strides = array<i32>} : memref<1x4x1xf32, #tpu.memory_space<vmem>>, vector<1x4x1xf32>,
    } else {
    }
    %c0_i32_4 = arith.constant 0 : i32
    %10 = arith.cmpi ne, %arg1, %c0_i32_4 : i32
    %11 = arith.extui %10 : i1 to i32
    %c0_i32_5 = arith.constant 0 : i32
    %12 = arith.cmpi ne, %11, %c0_i32_5 : i32
    scf.if %12 {
      %c0_8 = arith.constant 0 : index
      %c0_9 = arith.constant 0 : index
      %c0_10 = arith.constant 0 : index
      %16 = vector.load %arg3[%c0_8, %c0_9, %c0_10] : memref<1x4x1xf32, #tpu.memory_space<vmem>>, vector<1x4x1xf32>
      %17 = vector.shape_cast %16 : vector<1x4x1xf32> to vector<4x1xf32>
      %18 = arith.addf %17, %3 : vector<4x1xf32>
      %c0_11 = arith.constant 0 : index
      %c0_12 = arith.constant 0 : index
      %c0_13 = arith.constant 0 : index
      %19 = vector.load %arg3[%c0_11, %c0_12, %c0_13] : memref<1x4x1xf32, #tpu.memory_space<vmem>>, vector<1x4x1xf32>
      %20 = vector.shape_cast %19 : vector<1x4x1xf32> to vector<4x1xf32>
      %21 = vector.shape_cast %18 : vector<4x1xf32> to vector<1x4x1xf32>
      tpu.vector_store %arg3[%c0_11, %c0_12, %c0_13], %21 {strides = array<i32>} : memref<1x4x1xf32, #tpu.memory_space<vmem>>, vector<1x4x1xf32>,
      %c0_14 = arith.constant 0 : index
      %c0_15 = arith.constant 0 : index
      %c0_16 = arith.constant 0 : index
      %22 = vector.load %arg4[%c0_14, %c0_15, %c0_16] : memref<1x4x1xf32, #tpu.memory_space<vmem>>, vector<1x4x1xf32>
      %23 = vector.shape_cast %22 : vector<1x4x1xf32> to vector<4x1xf32>
      %24 = arith.addf %23, %6 : vector<4x1xf32>
      %c0_17 = arith.constant 0 : index
      %c0_18 = arith.constant 0 : index
      %c0_19 = arith.constant 0 : index
      %25 = vector.load %arg4[%c0_17, %c0_18, %c0_19] : memref<1x4x1xf32, #tpu.memory_space<vmem>>, vector<1x4x1xf32>
      %26 = vector.shape_cast %25 : vector<1x4x1xf32> to vector<4x1xf32>
      %27 = vector.shape_cast %24 : vector<4x1xf32> to vector<1x4x1xf32>
      tpu.vector_store %arg4[%c0_17, %c0_18, %c0_19], %27 {strides = array<i32>} : memref<1x4x1xf32, #tpu.memory_space<vmem>>, vector<1x4x1xf32>,
    } else {
    }
    %c0_i32_6 = arith.constant 0 : i32
    %13 = arith.cmpi eq, %arg1, %c0_i32_6 : i32
    %14 = arith.extui %13 : i1 to i32
    %c0_i32_7 = arith.constant 0 : i32
    %15 = arith.cmpi ne, %14, %c0_i32_7 : i32
    scf.if %15 {
      %c0_8 = arith.constant 0 : index
      %c0_9 = arith.constant 0 : index
      %c0_10 = arith.constant 0 : index
      %16 = vector.load %arg3[%c0_8, %c0_9, %c0_10] : memref<1x4x1xf32, #tpu.memory_space<vmem>>, vector<1x4x1xf32>
      %17 = vector.shape_cast %16 : vector<1x4x1xf32> to vector<4x1xf32>
      %c0_11 = arith.constant 0 : index
      %c0_12 = arith.constant 0 : index
      %c0_13 = arith.constant 0 : index
      %18 = vector.load %arg4[%c0_11, %c0_12, %c0_13] : memref<1x4x1xf32, #tpu.memory_space<vmem>>, vector<1x4x1xf32>
      %19 = vector.shape_cast %18 : vector<1x4x1xf32> to vector<4x1xf32>
      %cst_14 = arith.constant 2.560000e+02 : f32
      %20 = vector.broadcast %cst_14 : f32 to vector<4x1xf32>
      %21 = arith.divf %17, %20 : vector<4x1xf32>
      %cst_15 = arith.constant 2.560000e+02 : f32
      %22 = vector.broadcast %cst_15 : f32 to vector<4x1xf32>
      %23 = arith.mulf %22, %21 : vector<4x1xf32>
      %24 = arith.mulf %23, %21 : vector<4x1xf32>
      %25 = arith.subf %19, %24 : vector<4x1xf32>
      %cst_16 = arith.constant 2.550000e+02 : f32
      %26 = vector.broadcast %cst_16 : f32 to vector<4x1xf32>
      %27 = arith.divf %25, %26 : vector<4x1xf32>
      %c0_17 = arith.constant 0 : index
      %c0_18 = arith.constant 0 : index
      %c0_19 = arith.constant 0 : index
      %28 = vector.load %arg3[%c0_17, %c0_18, %c0_19] : memref<1x4x1xf32, #tpu.memory_space<vmem>>, vector<1x4x1xf32>
      %29 = vector.shape_cast %28 : vector<1x4x1xf32> to vector<4x1xf32>
      %30 = vector.shape_cast %21 : vector<4x1xf32> to vector<1x4x1xf32>
      tpu.vector_store %arg3[%c0_17, %c0_18, %c0_19], %30 {strides = array<i32>} : memref<1x4x1xf32, #tpu.memory_space<vmem>>, vector<1x4x1xf32>,
      %cst_20 = arith.constant 9.99999997E-7 : f32
      %31 = vector.broadcast %cst_20 : f32 to vector<4x1xf32>
      %32 = arith.addf %27, %31 : vector<4x1xf32>
      %33 = math.sqrt %32 : vector<4x1xf32>
      %c0_21 = arith.constant 0 : index
      %c0_22 = arith.constant 0 : index
      %c0_23 = arith.constant 0 : index
      %34 = vector.load %arg4[%c0_21, %c0_22, %c0_23] : memref<1x4x1xf32, #tpu.memory_space<vmem>>, vector<1x4x1xf32>
      %35 = vector.shape_cast %34 : vector<1x4x1xf32> to vector<4x1xf32>
      %36 = vector.shape_cast %33 : vector<4x1xf32> to vector<1x4x1xf32>
      tpu.vector_store %arg4[%c0_21, %c0_22, %c0_23], %36 {strides = array<i32>} : memref<1x4x1xf32, #tpu.memory_space<vmem>>, vector<1x4x1xf32>,
    } else {
    }
    return
  }
  func.func @transform_0(%arg0: i32, %arg1: i32) -> (i32, i32, i32) {
    %c0_i32 = arith.constant 0 : i32
    %c0_i32_0 = arith.constant 0 : i32
    return %arg0, %c0_i32, %arg1 : i32, i32, i32
  }
  func.func @transform_1(%arg0: i32, %arg1: i32) -> (i32, i32, i32) {
    %c0_i32 = arith.constant 0 : i32
    %c0_i32_0 = arith.constant 0 : i32
    %c0_i32_1 = arith.constant 0 : i32
    return %arg0, %c0_i32, %c0_i32_0 : i32, i32, i32
  }
  func.func @transform_2(%arg0: i32, %arg1: i32) -> (i32, i32, i32) {
    %c0_i32 = arith.constant 0 : i32
    %c0_i32_0 = arith.constant 0 : i32
    %c0_i32_1 = arith.constant 0 : i32
    return %arg0, %c0_i32, %c0_i32_0 : i32, i32, i32
  }
}

</mosaic_0001>

<bundles_post_ra>
// kernel: tpu_custom_call.1
= control target key start
LH: loop header
LB: loop body
LE: loop exit
PB: predicated region body
PF: predicated region fallthrough
CT: control target
= control target key end

     0   :  { %8 = vsyncpa [#allocation3], 0  ;;  %s657_s0 = inlined_call_operand.hbm [shape: f32[2,4,256], index: 0, kind: input, shape index: {}]   ;;  %s658_s1 = inlined_call_operand.vmem [shape: f32[2,4,1], index: 1, kind: output, shape index: {0}]   ;;  %s659_s2 = inlined_call_operand.vmem [shape: f32[2,4,1], index: 2, kind: output, shape index: {1}]  }
   0x1   :  { %10 = vsyncpa [#allocation3 + $0x1], 0  ;;  %s525_s9 = smov 0   ;;  %s527_s10 = smov 0  }
   0x2   :  { %s529_s11 = smov 0   ;;  %s531_s12 = smov 0  }
   0x3   :  { %s533_s13 = smov 0   ;;  %s535_s14 = smov 0  }
   0x4 LB: > { %s355_s15 = sadd.s32 4294967295, %s507_s14   ;;  %s28_s16 = sadd.s32 1, %s503_s13  ;;  %s507_s14 = sphi %s535_s14, %s16_s14   ;;  %s503_s13 = sphi %s533_s13, %s669_s13   ;;  %s499_s12 = sphi %s531_s12, %s668_s12   ;;  %s495_s11 = sphi %s529_s11, %s667_s11   ;;  %s491_s10 = sphi %s527_s10, %s666_s10   ;;  %s487_s9 = sphi %s525_s9, %s665_s9  }
   0x5   : > { %p30_p0 = scmp.ge.s32.totalorder %s28_s16, 2  ;;  %s37_s17 = sadd.s32 1, %s495_s11 }
   0x6   : > { %p44_p1 = scmp.ne.s32.totalorder %s495_s11, %s491_s10  ;;  %p45_p2 = scmp.eq.s32.totalorder %s507_s14, 0 }
   0x7   : > { %s671_s16 = smov (%p30_p0, %s28_s16), 0  ;;  %p50_p4 = scmp.ne.s32.totalorder %s491_s10, %s487_s9 }
   0x8   : > { %p561_p3 = por %p45_p2, %p44_p1  ;;  %s32_s19 = ssub.s32 %s503_s13, %s671_s16 }
   0x9   : > { %p51_p5 = scmp.eq.s32.totalorder %s355_s15, 0  ;;  %p35_p6 = scmp.eq.s32.totalorder %s32_s19, 0 }
   0xa   : > { %p375_p8 = scmp.lt.s32.totalorder %s507_s14, 2  ;;  %s126_s22 = sand.u32 1, %s495_s11  }
   0xb   : > { %p568_p7 = por %p51_p5, %p50_p4  ;;  %s368_s23 = sshll.u32 %s503_s13, 7 }
   0xc   : > { %s574_s21 = scalar_select %p35_p6, %s495_s11, %s37_s17  }
   0xd   : > { %s359_s24 = sshll.u32 %s126_s22, 3  ;;  %s581_s27 = scalar_lea.hbm %s657_s0, %s368_s23 }
   0xe   : > { %s130_s28 = scalar_lea.vmem [#allocation2], %s359_s24  ;;  %p585_p9 = pnand %p375_p8, %p561_p3 }
   0xf   : > { %s140_s29 = sshll.u32 %s130_s28, 4  ;;  %s127_s3 = scalar_lea.sflag [#allocation3], %s126_s22  ;;  %s589_s29 = int_to_ptr.vmem [resolvable:$true] %s140_s29 }
  0x10   : > { %s427_s4 = scalar_lea.hbm %s581_s27, 128  ;;  %p429_p13 = pneg %p585_p9 }
  0x11   : > { %p428_p12 = scmp.ne.s32.totalorder %s581_s27, %s427_s4  ;;  %s432_s7 = scalar_lea.hbm %s657_s0, 256 }
  0x12   : > { %p433_p2 = scmp.lt.u32.totalorder %s581_s27, %s657_s0  ;;  %p434_p3 = scmp.lt.u32.totalorder %s432_s7, %s427_s4 }
  0x13   : > { %p430_p0 = pnand %p429_p13, %p428_p12  ;;  %p436_p5 = scmp.lt.u32.totalorder %s427_s4, %s581_s27 }
  0x14   : > { %p435_p4 = por %p434_p3, %p433_p2 }
  0x15   : > { %p431_p1 = pneg %p430_p0 }
  0x16   : > { %p437_p6 = por %p436_p5, %p435_p4 }
  0x18   : > { %p438_p8 = pnand %p437_p6, %p431_p1 }
  0x1a   : > { %441 = shalt.err (!%p438_p8)
}
  0x1b   : > { %s442_s15 = scalar_lea.vmem %s589_s29, 128  ;;  %s509_s17 = smov [#allocation2]  }
  0x1c   : > { %p443_p12 = scmp.ne.s32.totalorder %s589_s29, %s442_s15  ;;  %s447_s18 = sshll.u32 %s509_s17, 4  ;;  %s448_s18 = int_to_ptr.vmem [resolvable:$false] %s447_s18 }
  0x1d   : > { %s449_s19 = scalar_lea.vmem %s448_s18, 256  ;;  %p450_p11 = scmp.lt.s32.totalorder %s589_s29, %s448_s18 }
  0x1e   : > { %p445_p0 = pnand %p443_p12, %p429_p13  ;;  %p451_p2 = scmp.lt.s32.totalorder %s449_s19, %s442_s15 }
  0x20   : > { %p446_p10 = pneg %p445_p0  ;;  %p452_p3 = por %p451_p2, %p450_p11 }
  0x22   : > { %p453_p4 = pnand %p452_p3, %p446_p10 }
  0x24   : > { %456 = shalt.err (!%p453_p4)
}
  0x25   : > { %374 = dma.hbm_to_vmem [thread:$0]  (!%p585_p9), %s581_s27, 128, %s589_s29, %s127_s3  }
  0x26   : > { %p663_p1 = scmp.lt.s32.totalorder %s507_s14, 3  ;;  %p664_p5 = scmp.ge.s32.totalorder %s507_s14, 1 }
  0x28   : > { %p146_p13 = pnand %p664_p5, %p663_p1 }
  0x29   : > { %s151_s22 = sand.u32 (!%p146_p13), 1, %s491_s10  }
  0x2a   : > { %149 = sbr.rel (%p146_p13) target bundleno = 234 (0xea), region = 24  ;;  %s363_s23 = sshll.u32 (!%p146_p13), %s151_s22, 3 }
  0x2b   : > { %s152_s24 = scalar_lea.sflag (!%p146_p13), [#allocation3], %s151_s22  ;;  %s155_s25 = scalar_lea.vmem (!%p146_p13), [#allocation2], %s363_s23 }
  0x31   : > { %482 = dma.done.wait (%p568_p7), %s152_s24, 128  }
  0x32   : > { %484 = vsyncadd (%p568_p7), %s152_s24, 4294967168  ;;  %vm192_vm0 = vcmask 1043456   ;;  %v188_v0 = vld [vmem:[%s155_s25] sm:$0xff]  ;;  %p180_p9 = scmp.lt.s32.totalorder %s499_s12, 1  ;;  %vm211_vm1 = vcmask 3072  }
  0x33   : > { %v190_v1 = vcombine.high %v188_v0, %v188_v0  ;;  %v193_v2 = vsel %vm192_vm0, %v188_v0, 0.0  ;;  %v198_v3 = vmul.f32 %v188_v0, %v188_v0 }
  0x34   : > { %s673_s12 = smov (!%p180_p9, %s499_s12), 1 }
  0x35   : > { %v194_v4 = vsel %vm192_vm0, %v190_v1, 0.0  ;;  %v200_v5 = vcombine.high %v198_v3, %v198_v3  ;;  %v202_v6 = vsel %vm192_vm0, %v198_v3, 0.0  ;;  %s364_s26 = sshll.u32 %s673_s12, 2 }
  0x36   : > { %v195_v7 = vadd.f32 %v194_v4, %v193_v2  ;;  %s183_s28 = scalar_lea.vmem %s658_s1, %s364_s26  ;;  %s187_s3 = scalar_lea.vmem %s659_s2, %s364_s26 }
  0x37   : > { %v203_v8 = vsel %vm192_vm0, %v200_v5, 0.0 }
  0x38   : > { %196 = vadd.xlane.f32.xlu0 %v195_v7  ;;  %v204_v9 = vadd.f32 %v203_v8, %v202_v6 }
  0x3c   : > { %205 = vadd.xlane.f32.xlu0 %v204_v9 }
  0xc5   : > { %v197_v10 = vpop.xlane.xlu0 %196 }
  0xc6   : > { %212 = vst.msk [vmem:[%s183_s28] sm:$0xf] %vm211_vm1, %v197_v10 }
  0xc9   : > { %v206_v11 = vpop.xlane.xlu0 %205 }
  0xca   : > { %213 = vst.msk [vmem:[%s187_s3] sm:$0xf] %vm211_vm1, %v206_v11 }
  0xcd   : > { %v228_v12 = vld [vmem:[%s183_s28] sm:$0xf] }
  0xce   : > { %v231_v13 = vmul.f32 0.00390625, %v228_v12 }
  0xd0   : > { %238 = vst.msk [vmem:[%s183_s28] sm:$0xf] %vm211_vm1, %v231_v13  ;;  %v232_v14 = vmul.f32 256.0, %v231_v13 }
  0xd1   : > { %v229_v15 = vld [vmem:[%s187_s3] sm:$0xf] }
  0xd2   : > { %v233_v16 = vmul.f32 %v232_v14, %v231_v13 }
  0xd4   : > { %v234_v17 = vsub.f32 %v229_v15, %v233_v16 }
  0xd6   : > { %v236_v18 = vmul.f32 0.003921569, %v234_v17 }
  0xd8   : > { %v239_v19 = vadd.f32 1e-06, %v236_v18 }
  0xda   : > { %425 = vrsqrt.f32 %v239_v19  ;;  %vm242_vm2 = vcmp.eq.f32.partialorder %v239_v19, inf  ;;  %v245_v22 = vand.u32 2147483648, %v239_v19  ;;  %vm244_vm3 = vcmp.eq.f32.partialorder %v239_v19, 0.0 }
  0xe4   : > { %v426_v20 = vpop.eup %425 }
  0xe5   : > { %v241_v21 = vmul.f32 %v426_v20, %v239_v19 }
  0xe7   : > { %v243_v23 = vsel %vm242_vm2, %v239_v19, %v241_v21 }
  0xe8   : > { %v246_v24 = vsel %vm244_vm3, %v245_v22, %v243_v23 }
  0xe9   : > { %247 = vst.msk [vmem:[%s187_s3] sm:$0xf] %vm211_vm1, %v246_v24 }
  0xea PF: > { %s16_s14 = sadd.s32 1, %s507_s14   ;;  %s665_s9 = smov %s491_s10 }
  0xeb   : > { %p13_p7 = scmp.ge.s32.totalorder %s16_s14, 4   ;;  %s666_s10 = smov %s495_s11 }
  0xec   : > { %s667_s11 = smov %s574_s21  ;;  %s668_s12 = smov %s503_s13 }
  0xed   : > { %s669_s13 = smov %s671_s16  ;;  %15 = sbr.rel (!%p13_p7) target bundleno = 4 (0x4), region = 88 }
  0xf4   :  { %281 = vsyncpa [#allocation3], 1 }
  0xf5   :  { %283 = vsyncpa [#allocation3 + $0x1], 1 }

</bundles_post_ra>
